<compile_context>
chip_gen: v6e
topology: v6e:2x2x1
jax: 0.10.0
libtpu: 0.0.40
codegen_flags: <defaults>
</compile_context>

<pallas_src>
import jax
import jax.numpy as jnp
from jax import lax
from jax.experimental import pallas as pl
from jax.experimental.pallas import tpu as pltpu


def _lstm_linear_kernel(x_ref, w_ih_ref, w_hh_ref, b_ref, w_out_ref, b_out_ref,
                        out_ref, h_ref, c_ref, gates_ref, hist_ref):
    """One time-chunk of the LSTM recurrence + output projection.

    x_ref:     (Tt*B, I)   flattened input chunk (time-major rows)
    w_ih_ref:  (I, 4H)     input->gates weight (transposed weight_ih_l0)
    w_hh_ref:  (H, 4H)     hidden->gates weight (transposed weight_hh_l0)
    b_ref:     (1, 4H)     combined bias (b_ih + b_hh)
    w_out_ref: (H, O)      output Linear weight (transposed)
    b_out_ref: (1, O)      output Linear bias
    out_ref:   (Tt*B, O)   chunk of out(lstm_out)
    h_ref, c_ref: (B, H)   persistent VMEM state (carried across grid steps)
    gates_ref: (Tt*B, 4H)  scratch: precomputed x-projection for the chunk
    hist_ref:  (Tt*B, H)   scratch: per-timestep hidden states of the chunk
    """
    B, H = h_ref.shape
    Tt = x_ref.shape[0] // B

    # Hidden/cell state starts at zeros (matches init_hidden()) on chunk 0.
    @pl.when(pl.program_id(0) == 0)
    def _init():
        h_ref[...] = jnp.zeros_like(h_ref)
        c_ref[...] = jnp.zeros_like(c_ref)

    # ---- Phase 1: batched input projection for the whole chunk (one big
    # MXU matmul, bias folded in) -- hoisted out of the serial recurrence.
    gates_ref[...] = (jnp.dot(x_ref[...], w_ih_ref[...],
                              preferred_element_type=jnp.float32)
                      + b_ref[...])

    # Hoist loop-invariant loads out of the recurrence.
    w_hh = w_hh_ref[...]
    h0 = h_ref[...]
    c0 = c_ref[...]

    # ---- Phase 2: serial recurrence; only h @ W_hh + gate math per step.
    def step(t, carry):
        h, c = carry
        row = pl.multiple_of(t * B, 8)
        g = gates_ref[pl.ds(row, B), :] + jnp.dot(
            h, w_hh, preferred_element_type=jnp.float32)       # (B, 4H)

        # PyTorch gate ordering: i, f, g, o
        i_g = jax.nn.sigmoid(g[:, 0 * H:1 * H])
        f_g = jax.nn.sigmoid(g[:, 1 * H:2 * H])
        g_g = jnp.tanh(g[:, 2 * H:3 * H])
        o_g = jax.nn.sigmoid(g[:, 3 * H:4 * H])

        c_new = f_g * c + i_g * g_g
        h_new = o_g * jnp.tanh(c_new)
        hist_ref[pl.ds(row, B), :] = h_new
        return h_new, c_new

    h_f, c_f = lax.fori_loop(0, Tt, step, (h0, c0), unroll=True)
    h_ref[...] = h_f
    c_ref[...] = c_f

    # ---- Phase 3: batched output Linear + single store for the whole chunk.
    out_ref[...] = (jnp.dot(hist_ref[...], w_out_ref[...],
                            preferred_element_type=jnp.float32)
                    + b_out_ref[...]).astype(out_ref.dtype)


def rnn_forward(x, w_ih, w_hh, b_ih, b_hh, w_out, b_out, *, time_chunk=32):
    """x: (T, B, I) float32.  Weights in PyTorch layout:
       w_ih (4H, I), w_hh (4H, H), b_ih/b_hh (4H,), w_out (O, H), b_out (O,)."""
    T, B, I = x.shape
    H = w_hh.shape[1]
    O = w_out.shape[0]

    # Pad batch to the f32 sublane multiple (8); pad T to a multiple of the
    # time chunk.  Padded rows/timesteps never feed real outputs.
    Bp = -(-B // 8) * 8
    Tt = min(time_chunk, T)
    Tp = -(-T // Tt) * Tt
    grid = (Tp // Tt,)

    x_p = jnp.zeros((Tp, Bp, I), jnp.float32)
    x_p = x_p.at[:T, :B].set(x.astype(jnp.float32))
    x_2d = x_p.reshape(Tp * Bp, I)                        # time-major rows

    # Glue: transpose weights so the kernel's matmuls are plain row-major dots.
    w_ih_t = jnp.asarray(w_ih, jnp.float32).T             # (I, 4H)
    w_hh_t = jnp.asarray(w_hh, jnp.float32).T             # (H, 4H)
    b = (jnp.asarray(b_ih, jnp.float32)
         + jnp.asarray(b_hh, jnp.float32)).reshape(1, 4 * H)
    w_out_t = jnp.asarray(w_out, jnp.float32).T           # (H, O)
    b_out_r = jnp.asarray(b_out, jnp.float32).reshape(1, O)

    rows = Tt * Bp
    # Rough VMEM budget (bytes): double-buffered x/out chunks + resident
    # weights + scratch, with 2x headroom; clamp to a limit safe on v5e/v6e/v7x.
    need = 4 * (2 * rows * I + 2 * rows * O
                + I * 4 * H + H * 4 * H + 4 * H + H * O + O
                + 2 * Bp * H + rows * 4 * H + rows * H)
    vmem_limit = int(min(max(2 * need, 4 * 1024 * 1024), 32 * 1024 * 1024))

    out_2d = pl.pallas_call(
        _lstm_linear_kernel,
        out_shape=jax.ShapeDtypeStruct((Tp * Bp, O), jnp.float32),
        grid_spec=pltpu.PrefetchScalarGridSpec(
            num_scalar_prefetch=0,
            grid=grid,
            in_specs=[
                pl.BlockSpec((rows, I), lambda t: (t, 0)),        # x chunk
                pl.BlockSpec((I, 4 * H), lambda t: (0, 0)),       # W_ih (resident)
                pl.BlockSpec((H, 4 * H), lambda t: (0, 0)),       # W_hh (resident)
                pl.BlockSpec((1, 4 * H), lambda t: (0, 0)),       # bias
                pl.BlockSpec((H, O), lambda t: (0, 0)),           # W_out (resident)
                pl.BlockSpec((1, O), lambda t: (0, 0)),           # b_out
            ],
            out_specs=pl.BlockSpec((rows, O), lambda t: (t, 0)),  # out chunk
            scratch_shapes=[
                pltpu.VMEM((Bp, H), jnp.float32),       # h (persists over grid)
                pltpu.VMEM((Bp, H), jnp.float32),       # c (persists over grid)
                pltpu.VMEM((rows, 4 * H), jnp.float32),  # gates_x chunk
                pltpu.VMEM((rows, H), jnp.float32),      # h history chunk
            ],
        ),
        compiler_params=pltpu.CompilerParams(
            dimension_semantics=("arbitrary",),   # time chunks carry state -> serial
            vmem_limit_bytes=vmem_limit,
        ),
    )(x_2d, w_ih_t, w_hh_t, b, w_out_t, b_out_r)

    return out_2d.reshape(Tp, Bp, O)[:T, :B]


def _reference(x, w_ih, w_hh, b_ih, b_hh, w_out, b_out):
    """Pure-JAX reference identical to PyTorch nn.LSTM + Linear forward."""
    T, B, I = x.shape
    H = w_hh.shape[1]

    def step(carry, x_t):
        h, c = carry
        gates = x_t @ w_ih.T + b_ih + h @ w_hh.T + b_hh
        i = jax.nn.sigmoid(gates[:, 0 * H:1 * H])
        f = jax.nn.sigmoid(gates[:, 1 * H:2 * H])
        g = jnp.tanh(gates[:, 2 * H:3 * H])
        o = jax.nn.sigmoid(gates[:, 3 * H:4 * H])
        c = f * c + i * g
        h = o * jnp.tanh(c)
        return (h, c), h

    h0 = jnp.zeros((B, H), jnp.float32)
    c0 = jnp.zeros((B, H), jnp.float32)
    _, hs = lax.scan(step, (h0, c0), x)
    return hs @ w_out.T + b_out


if __name__ == "__main__":
    # Small shapes consistent with the module's forward (seq-major LSTM input).
    T, B, I, H, O = 8, 2, 16, 32, 8

    key = jax.random.PRNGKey(0)
    ks = jax.random.split(key, 7)
    bound = 1.0 / jnp.sqrt(jnp.float32(H))   # PyTorch LSTM/Linear-style init

    x = jax.random.normal(ks[0], (T, B, I), jnp.float32)
    w_ih = jax.random.uniform(ks[1], (4 * H, I), jnp.float32, -bound, bound)
    w_hh = jax.random.uniform(ks[2], (4 * H, H), jnp.float32, -bound, bound)
    b_ih = jax.random.uniform(ks[3], (4 * H,), jnp.float32, -bound, bound)
    b_hh = jax.random.uniform(ks[4], (4 * H,), jnp.float32, -bound, bound)
    w_out = jax.random.uniform(ks[5], (O, H), jnp.float32, -bound, bound)
    b_out = jax.random.uniform(ks[6], (O,), jnp.float32, -bound, bound)

    out = rnn_forward(x, w_ih, w_hh, b_ih, b_hh, w_out, b_out)
    out = jax.block_until_ready(out)

    ref = _reference(x, w_ih, w_hh, b_ih, b_hh, w_out, b_out)
    assert out.shape == (T, B, O)
    assert jnp.allclose(out, ref, atol=1e-5, rtol=1e-5), "mismatch vs reference"

    # NOTE: self.hidden2out and self.softmax are defined in __init__ but unused
    # in forward(), so they are intentionally not part of the kernel.
    # TODO(synk): the PyTorch module mutates self.hidden across calls; this
    # kernel (like init_hidden()) starts each forward from zero h/c state.
    print("KERNEL_OK")
</pallas_src>

<mosaic_0001>
module attributes {stable_mosaic.version = 11 : i64} {
  func.func @_lstm_linear_kernel(%arg0: i32, %arg1: memref<64x16xf32, #tpu.memory_space<vmem>>, %arg2: memref<16x128xf32, #tpu.memory_space<vmem>>, %arg3: memref<32x128xf32, #tpu.memory_space<vmem>>, %arg4: memref<1x128xf32, #tpu.memory_space<vmem>>, %arg5: memref<32x8xf32, #tpu.memory_space<vmem>>, %arg6: memref<1x8xf32, #tpu.memory_space<vmem>>, %arg7: memref<64x8xf32, #tpu.memory_space<vmem>>, %arg8: memref<8x32xf32, #tpu.memory_space<vmem>>, %arg9: memref<8x32xf32, #tpu.memory_space<vmem>>, %arg10: memref<64x128xf32, #tpu.memory_space<vmem>>, %arg11: memref<64x32xf32, #tpu.memory_space<vmem>>) attributes {dimension_semantics = [#tpu.dimension_semantics<arbitrary>], iteration_bounds = array<i64: 1>, scalar_prefetch = 0 : i64, scratch_operands = 4 : i64, tpu.core_type = #tpu.core_type<tc>, window_params = [{transform_indices = @transform_0, window_bounds = array<i64: 64, 16>}, {pipeline_mode = #tpu.pipeline_mode<synchronous>, transform_indices = @transform_1, window_bounds = array<i64: 16, 128>}, {pipeline_mode = #tpu.pipeline_mode<synchronous>, transform_indices = @transform_2, window_bounds = array<i64: 32, 128>}, {pipeline_mode = #tpu.pipeline_mode<synchronous>, transform_indices = @transform_3, window_bounds = array<i64: 1, 128>}, {pipeline_mode = #tpu.pipeline_mode<synchronous>, transform_indices = @transform_4, window_bounds = array<i64: 32, 8>}, {pipeline_mode = #tpu.pipeline_mode<synchronous>, transform_indices = @transform_5, window_bounds = array<i64: 1, 8>}, {transform_indices = @transform_6, window_bounds = array<i64: 64, 8>}]} {
    %c0_i32 = arith.constant 0 : i32
    %0 = arith.cmpi eq, %arg0, %c0_i32 : i32
    %1 = arith.extui %0 : i1 to i32
    %c0_i32_0 = arith.constant 0 : i32
    %2 = arith.cmpi ne, %1, %c0_i32_0 : i32
    scf.if %2 {
      %cst_84 = arith.constant 0.000000e+00 : f32
      %286 = vector.broadcast %cst_84 : f32 to vector<8x32xf32>
      %c0_85 = arith.constant 0 : index
      %c0_86 = arith.constant 0 : index
      %287 = vector.load %arg8[%c0_85, %c0_86] : memref<8x32xf32, #tpu.memory_space<vmem>>, vector<8x32xf32>
      tpu.vector_store %arg8[%c0_85, %c0_86], %286 {strides = array<i32>} : memref<8x32xf32, #tpu.memory_space<vmem>>, vector<8x32xf32>,
      %cst_87 = arith.constant 0.000000e+00 : f32
      %288 = vector.broadcast %cst_87 : f32 to vector<8x32xf32>
      %c0_88 = arith.constant 0 : index
      %c0_89 = arith.constant 0 : index
      %289 = vector.load %arg9[%c0_88, %c0_89] : memref<8x32xf32, #tpu.memory_space<vmem>>, vector<8x32xf32>
      tpu.vector_store %arg9[%c0_88, %c0_89], %288 {strides = array<i32>} : memref<8x32xf32, #tpu.memory_space<vmem>>, vector<8x32xf32>,
    } else {
    }
    %c0 = arith.constant 0 : index
    %c0_1 = arith.constant 0 : index
    %3 = vector.load %arg1[%c0, %c0_1] : memref<64x16xf32, #tpu.memory_space<vmem>>, vector<64x16xf32>
    %c0_2 = arith.constant 0 : index
    %c0_3 = arith.constant 0 : index
    %4 = vector.load %arg2[%c0_2, %c0_3] : memref<16x128xf32, #tpu.memory_space<vmem>>, vector<16x128xf32>
    %cst = arith.constant dense<0.000000e+00> : vector<64x128xf32>
    %5 = tpu.matmul %3, %4, %cst {dimension_numbers = #tpu.dot_dimension_numbers<[1], [0], [0], [1], [0, 0, 1, 1], [], []>} : vector<64x16xf32>, vector<16x128xf32>, vector<64x128xf32> -> vector<64x128xf32>
    %c0_4 = arith.constant 0 : index
    %c0_5 = arith.constant 0 : index
    %6 = vector.load %arg4[%c0_4, %c0_5] : memref<1x128xf32, #tpu.memory_space<vmem>>, vector<1x128xf32>
    %7 = vector.broadcast %6 : vector<1x128xf32> to vector<64x128xf32>
    %8 = arith.addf %5, %7 : vector<64x128xf32>
    %c0_6 = arith.constant 0 : index
    %c0_7 = arith.constant 0 : index
    %9 = vector.load %arg10[%c0_6, %c0_7] : memref<64x128xf32, #tpu.memory_space<vmem>>, vector<64x128xf32>
    tpu.vector_store %arg10[%c0_6, %c0_7], %8 {strides = array<i32>} : memref<64x128xf32, #tpu.memory_space<vmem>>, vector<64x128xf32>,
    %c0_8 = arith.constant 0 : index
    %c0_9 = arith.constant 0 : index
    %10 = vector.load %arg3[%c0_8, %c0_9] : memref<32x128xf32, #tpu.memory_space<vmem>>, vector<32x128xf32>
    %c0_10 = arith.constant 0 : index
    %c0_11 = arith.constant 0 : index
    %11 = vector.load %arg8[%c0_10, %c0_11] : memref<8x32xf32, #tpu.memory_space<vmem>>, vector<8x32xf32>
    %c0_12 = arith.constant 0 : index
    %c0_13 = arith.constant 0 : index
    %12 = vector.load %arg9[%c0_12, %c0_13] : memref<8x32xf32, #tpu.memory_space<vmem>>, vector<8x32xf32>
    %c0_i32_14 = arith.constant 0 : i32
    %c8_i32 = arith.constant 8 : i32
    %13 = arith.muli %c0_i32_14, %c8_i32 : i32
    %14 = tpu.assume_multiple %13, 8 : i32
    %15 = arith.index_cast %14 : i32 to index
    %c0_15 = arith.constant 0 : index
    %16 = vector.load %arg10[%15, %c0_15] : memref<64x128xf32, #tpu.memory_space<vmem>>, vector<8x128xf32>
    %cst_16 = arith.constant dense<0.000000e+00> : vector<8x128xf32>
    %17 = tpu.matmul %11, %10, %cst_16 {dimension_numbers = #tpu.dot_dimension_numbers<[1], [0], [0], [1], [0, 0, 1, 1], [], []>} : vector<8x32xf32>, vector<32x128xf32>, vector<8x128xf32> -> vector<8x128xf32>
    %18 = arith.addf %16, %17 : vector<8x128xf32>
    %19 = vector.extract_strided_slice %18 {offsets = [0, 0], sizes = [8, 32], strides = [1, 1]} : vector<8x128xf32> to vector<8x32xf32>
    %20 = arith.negf %19 : vector<8x32xf32>
    %21 = math.exp %20 : vector<8x32xf32>
    %cst_17 = arith.constant 1.000000e+00 : f32
    %22 = vector.broadcast %cst_17 : f32 to vector<8x32xf32>
    %23 = arith.addf %22, %21 : vector<8x32xf32>
    %24 = arith.divf %22, %23 : vector<8x32xf32>
    %25 = vector.extract_strided_slice %18 {offsets = [0, 32], sizes = [8, 32], strides = [1, 1]} : vector<8x128xf32> to vector<8x32xf32>
    %26 = arith.negf %25 : vector<8x32xf32>
    %27 = math.exp %26 : vector<8x32xf32>
    %cst_18 = arith.constant 1.000000e+00 : f32
    %28 = vector.broadcast %cst_18 : f32 to vector<8x32xf32>
    %29 = arith.addf %28, %27 : vector<8x32xf32>
    %30 = arith.divf %28, %29 : vector<8x32xf32>
    %31 = vector.extract_strided_slice %18 {offsets = [0, 64], sizes = [8, 32], strides = [1, 1]} : vector<8x128xf32> to vector<8x32xf32>
    %32 = math.tanh %31 : vector<8x32xf32>
    %33 = vector.extract_strided_slice %18 {offsets = [0, 96], sizes = [8, 32], strides = [1, 1]} : vector<8x128xf32> to vector<8x32xf32>
    %34 = arith.negf %33 : vector<8x32xf32>
    %35 = math.exp %34 : vector<8x32xf32>
    %cst_19 = arith.constant 1.000000e+00 : f32
    %36 = vector.broadcast %cst_19 : f32 to vector<8x32xf32>
    %37 = arith.addf %36, %35 : vector<8x32xf32>
    %38 = arith.divf %36, %37 : vector<8x32xf32>
    %39 = arith.mulf %30, %12 : vector<8x32xf32>
    %40 = arith.mulf %24, %32 : vector<8x32xf32>
    %41 = arith.addf %39, %40 : vector<8x32xf32>
    %42 = math.tanh %41 : vector<8x32xf32>
    %43 = arith.mulf %38, %42 : vector<8x32xf32>
    %44 = arith.index_cast %14 : i32 to index
    %c0_20 = arith.constant 0 : index
    %45 = vector.load %arg11[%44, %c0_20] : memref<64x32xf32, #tpu.memory_space<vmem>>, vector<8x32xf32>
    tpu.vector_store %arg11[%44, %c0_20], %43 {strides = array<i32>} : memref<64x32xf32, #tpu.memory_space<vmem>>, vector<8x32xf32>,
    %c1_i32 = arith.constant 1 : i32
    %c8_i32_21 = arith.constant 8 : i32
    %46 = arith.muli %c1_i32, %c8_i32_21 : i32
    %47 = tpu.assume_multiple %46, 8 : i32
    %48 = arith.index_cast %47 : i32 to index
    %c0_22 = arith.constant 0 : index
    %49 = vector.load %arg10[%48, %c0_22] : memref<64x128xf32, #tpu.memory_space<vmem>>, vector<8x128xf32>
    %cst_23 = arith.constant dense<0.000000e+00> : vector<8x128xf32>
    %50 = tpu.matmul %43, %10, %cst_23 {dimension_numbers = #tpu.dot_dimension_numbers<[1], [0], [0], [1], [0, 0, 1, 1], [], []>} : vector<8x32xf32>, vector<32x128xf32>, vector<8x128xf32> -> vector<8x128xf32>
    %51 = arith.addf %49, %50 : vector<8x128xf32>
    %52 = vector.extract_strided_slice %51 {offsets = [0, 0], sizes = [8, 32], strides = [1, 1]} : vector<8x128xf32> to vector<8x32xf32>
    %53 = arith.negf %52 : vector<8x32xf32>
    %54 = math.exp %53 : vector<8x32xf32>
    %cst_24 = arith.constant 1.000000e+00 : f32
    %55 = vector.broadcast %cst_24 : f32 to vector<8x32xf32>
    %56 = arith.addf %55, %54 : vector<8x32xf32>
    %57 = arith.divf %55, %56 : vector<8x32xf32>
    %58 = vector.extract_strided_slice %51 {offsets = [0, 32], sizes = [8, 32], strides = [1, 1]} : vector<8x128xf32> to vector<8x32xf32>
    %59 = arith.negf %58 : vector<8x32xf32>
    %60 = math.exp %59 : vector<8x32xf32>
    %cst_25 = arith.constant 1.000000e+00 : f32
    %61 = vector.broadcast %cst_25 : f32 to vector<8x32xf32>
    %62 = arith.addf %61, %60 : vector<8x32xf32>
    %63 = arith.divf %61, %62 : vector<8x32xf32>
    %64 = vector.extract_strided_slice %51 {offsets = [0, 64], sizes = [8, 32], strides = [1, 1]} : vector<8x128xf32> to vector<8x32xf32>
    %65 = math.tanh %64 : vector<8x32xf32>
    %66 = vector.extract_strided_slice %51 {offsets = [0, 96], sizes = [8, 32], strides = [1, 1]} : vector<8x128xf32> to vector<8x32xf32>
    %67 = arith.negf %66 : vector<8x32xf32>
    %68 = math.exp %67 : vector<8x32xf32>
    %cst_26 = arith.constant 1.000000e+00 : f32
    %69 = vector.broadcast %cst_26 : f32 to vector<8x32xf32>
    %70 = arith.addf %69, %68 : vector<8x32xf32>
    %71 = arith.divf %69, %70 : vector<8x32xf32>
    %72 = arith.mulf %63, %41 : vector<8x32xf32>
    %73 = arith.mulf %57, %65 : vector<8x32xf32>
    %74 = arith.addf %72, %73 : vector<8x32xf32>
    %75 = math.tanh %74 : vector<8x32xf32>
    %76 = arith.mulf %71, %75 : vector<8x32xf32>
    %77 = arith.index_cast %47 : i32 to index
    %c0_27 = arith.constant 0 : index
    %78 = vector.load %arg11[%77, %c0_27] : memref<64x32xf32, #tpu.memory_space<vmem>>, vector<8x32xf32>
    tpu.vector_store %arg11[%77, %c0_27], %76 {strides = array<i32>} : memref<64x32xf32, #tpu.memory_space<vmem>>, vector<8x32xf32>,
    %c2_i32 = arith.constant 2 : i32
    %c8_i32_28 = arith.constant 8 : i32
    %79 = arith.muli %c2_i32, %c8_i32_28 : i32
    %80 = tpu.assume_multiple %79, 8 : i32
    %81 = arith.index_cast %80 : i32 to index
    %c0_29 = arith.constant 0 : index
    %82 = vector.load %arg10[%81, %c0_29] : memref<64x128xf32, #tpu.memory_space<vmem>>, vector<8x128xf32>
    %cst_30 = arith.constant dense<0.000000e+00> : vector<8x128xf32>
    %83 = tpu.matmul %76, %10, %cst_30 {dimension_numbers = #tpu.dot_dimension_numbers<[1], [0], [0], [1], [0, 0, 1, 1], [], []>} : vector<8x32xf32>, vector<32x128xf32>, vector<8x128xf32> -> vector<8x128xf32>
    %84 = arith.addf %82, %83 : vector<8x128xf32>
    %85 = vector.extract_strided_slice %84 {offsets = [0, 0], sizes = [8, 32], strides = [1, 1]} : vector<8x128xf32> to vector<8x32xf32>
    %86 = arith.negf %85 : vector<8x32xf32>
    %87 = math.exp %86 : vector<8x32xf32>
    %cst_31 = arith.constant 1.000000e+00 : f32
    %88 = vector.broadcast %cst_31 : f32 to vector<8x32xf32>
    %89 = arith.addf %88, %87 : vector<8x32xf32>
    %90 = arith.divf %88, %89 : vector<8x32xf32>
    %91 = vector.extract_strided_slice %84 {offsets = [0, 32], sizes = [8, 32], strides = [1, 1]} : vector<8x128xf32> to vector<8x32xf32>
    %92 = arith.negf %91 : vector<8x32xf32>
    %93 = math.exp %92 : vector<8x32xf32>
    %cst_32 = arith.constant 1.000000e+00 : f32
    %94 = vector.broadcast %cst_32 : f32 to vector<8x32xf32>
    %95 = arith.addf %94, %93 : vector<8x32xf32>
    %96 = arith.divf %94, %95 : vector<8x32xf32>
    %97 = vector.extract_strided_slice %84 {offsets = [0, 64], sizes = [8, 32], strides = [1, 1]} : vector<8x128xf32> to vector<8x32xf32>
    %98 = math.tanh %97 : vector<8x32xf32>
    %99 = vector.extract_strided_slice %84 {offsets = [0, 96], sizes = [8, 32], strides = [1, 1]} : vector<8x128xf32> to vector<8x32xf32>
    %100 = arith.negf %99 : vector<8x32xf32>
    %101 = math.exp %100 : vector<8x32xf32>
    %cst_33 = arith.constant 1.000000e+00 : f32
    %102 = vector.broadcast %cst_33 : f32 to vector<8x32xf32>
    %103 = arith.addf %102, %101 : vector<8x32xf32>
    %104 = arith.divf %102, %103 : vector<8x32xf32>
    %105 = arith.mulf %96, %74 : vector<8x32xf32>
    %106 = arith.mulf %90, %98 : vector<8x32xf32>
    %107 = arith.addf %105, %106 : vector<8x32xf32>
    %108 = math.tanh %107 : vector<8x32xf32>
    %109 = arith.mulf %104, %108 : vector<8x32xf32>
    %110 = arith.index_cast %80 : i32 to index
    %c0_34 = arith.constant 0 : index
    %111 = vector.load %arg11[%110, %c0_34] : memref<64x32xf32, #tpu.memory_space<vmem>>, vector<8x32xf32>
    tpu.vector_store %arg11[%110, %c0_34], %109 {strides = array<i32>} : memref<64x32xf32, #tpu.memory_space<vmem>>, vector<8x32xf32>,
    %c3_i32 = arith.constant 3 : i32
    %c8_i32_35 = arith.constant 8 : i32
    %112 = arith.muli %c3_i32, %c8_i32_35 : i32
    %113 = tpu.assume_multiple %112, 8 : i32
    %114 = arith.index_cast %113 : i32 to index
    %c0_36 = arith.constant 0 : index
    %115 = vector.load %arg10[%114, %c0_36] : memref<64x128xf32, #tpu.memory_space<vmem>>, vector<8x128xf32>
    %cst_37 = arith.constant dense<0.000000e+00> : vector<8x128xf32>
    %116 = tpu.matmul %109, %10, %cst_37 {dimension_numbers = #tpu.dot_dimension_numbers<[1], [0], [0], [1], [0, 0, 1, 1], [], []>} : vector<8x32xf32>, vector<32x128xf32>, vector<8x128xf32> -> vector<8x128xf32>
    %117 = arith.addf %115, %116 : vector<8x128xf32>
    %118 = vector.extract_strided_slice %117 {offsets = [0, 0], sizes = [8, 32], strides = [1, 1]} : vector<8x128xf32> to vector<8x32xf32>
    %119 = arith.negf %118 : vector<8x32xf32>
    %120 = math.exp %119 : vector<8x32xf32>
    %cst_38 = arith.constant 1.000000e+00 : f32
    %121 = vector.broadcast %cst_38 : f32 to vector<8x32xf32>
    %122 = arith.addf %121, %120 : vector<8x32xf32>
    %123 = arith.divf %121, %122 : vector<8x32xf32>
    %124 = vector.extract_strided_slice %117 {offsets = [0, 32], sizes = [8, 32], strides = [1, 1]} : vector<8x128xf32> to vector<8x32xf32>
    %125 = arith.negf %124 : vector<8x32xf32>
    %126 = math.exp %125 : vector<8x32xf32>
    %cst_39 = arith.constant 1.000000e+00 : f32
    %127 = vector.broadcast %cst_39 : f32 to vector<8x32xf32>
    %128 = arith.addf %127, %126 : vector<8x32xf32>
    %129 = arith.divf %127, %128 : vector<8x32xf32>
    %130 = vector.extract_strided_slice %117 {offsets = [0, 64], sizes = [8, 32], strides = [1, 1]} : vector<8x128xf32> to vector<8x32xf32>
    %131 = math.tanh %130 : vector<8x32xf32>
    %132 = vector.extract_strided_slice %117 {offsets = [0, 96], sizes = [8, 32], strides = [1, 1]} : vector<8x128xf32> to vector<8x32xf32>
    %133 = arith.negf %132 : vector<8x32xf32>
    %134 = math.exp %133 : vector<8x32xf32>
    %cst_40 = arith.constant 1.000000e+00 : f32
    %135 = vector.broadcast %cst_40 : f32 to vector<8x32xf32>
    %136 = arith.addf %135, %134 : vector<8x32xf32>
    %137 = arith.divf %135, %136 : vector<8x32xf32>
    %138 = arith.mulf %129, %107 : vector<8x32xf32>
    %139 = arith.mulf %123, %131 : vector<8x32xf32>
    %140 = arith.addf %138, %139 : vector<8x32xf32>
    %141 = math.tanh %140 : vector<8x32xf32>
    %142 = arith.mulf %137, %141 : vector<8x32xf32>
    %143 = arith.index_cast %113 : i32 to index
    %c0_41 = arith.constant 0 : index
    %144 = vector.load %arg11[%143, %c0_41] : memref<64x32xf32, #tpu.memory_space<vmem>>, vector<8x32xf32>
    tpu.vector_store %arg11[%143, %c0_41], %142 {strides = array<i32>} : memref<64x32xf32, #tpu.memory_space<vmem>>, vector<8x32xf32>,
    %c4_i32 = arith.constant 4 : i32
    %c8_i32_42 = arith.constant 8 : i32
    %145 = arith.muli %c4_i32, %c8_i32_42 : i32
    %146 = tpu.assume_multiple %145, 8 : i32
    %147 = arith.index_cast %146 : i32 to index
    %c0_43 = arith.constant 0 : index
    %148 = vector.load %arg10[%147, %c0_43] : memref<64x128xf32, #tpu.memory_space<vmem>>, vector<8x128xf32>
    %cst_44 = arith.constant dense<0.000000e+00> : vector<8x128xf32>
    %149 = tpu.matmul %142, %10, %cst_44 {dimension_numbers = #tpu.dot_dimension_numbers<[1], [0], [0], [1], [0, 0, 1, 1], [], []>} : vector<8x32xf32>, vector<32x128xf32>, vector<8x128xf32> -> vector<8x128xf32>
    %150 = arith.addf %148, %149 : vector<8x128xf32>
    %151 = vector.extract_strided_slice %150 {offsets = [0, 0], sizes = [8, 32], strides = [1, 1]} : vector<8x128xf32> to vector<8x32xf32>
    %152 = arith.negf %151 : vector<8x32xf32>
    %153 = math.exp %152 : vector<8x32xf32>
    %cst_45 = arith.constant 1.000000e+00 : f32
    %154 = vector.broadcast %cst_45 : f32 to vector<8x32xf32>
    %155 = arith.addf %154, %153 : vector<8x32xf32>
    %156 = arith.divf %154, %155 : vector<8x32xf32>
    %157 = vector.extract_strided_slice %150 {offsets = [0, 32], sizes = [8, 32], strides = [1, 1]} : vector<8x128xf32> to vector<8x32xf32>
    %158 = arith.negf %157 : vector<8x32xf32>
    %159 = math.exp %158 : vector<8x32xf32>
    %cst_46 = arith.constant 1.000000e+00 : f32
    %160 = vector.broadcast %cst_46 : f32 to vector<8x32xf32>
    %161 = arith.addf %160, %159 : vector<8x32xf32>
    %162 = arith.divf %160, %161 : vector<8x32xf32>
    %163 = vector.extract_strided_slice %150 {offsets = [0, 64], sizes = [8, 32], strides = [1, 1]} : vector<8x128xf32> to vector<8x32xf32>
    %164 = math.tanh %163 : vector<8x32xf32>
    %165 = vector.extract_strided_slice %150 {offsets = [0, 96], sizes = [8, 32], strides = [1, 1]} : vector<8x128xf32> to vector<8x32xf32>
    %166 = arith.negf %165 : vector<8x32xf32>
    %167 = math.exp %166 : vector<8x32xf32>
    %cst_47 = arith.constant 1.000000e+00 : f32
    %168 = vector.broadcast %cst_47 : f32 to vector<8x32xf32>
    %169 = arith.addf %168, %167 : vector<8x32xf32>
    %170 = arith.divf %168, %169 : vector<8x32xf32>
    %171 = arith.mulf %162, %140 : vector<8x32xf32>
    %172 = arith.mulf %156, %164 : vector<8x32xf32>
    %173 = arith.addf %171, %172 : vector<8x32xf32>
    %174 = math.tanh %173 : vector<8x32xf32>
    %175 = arith.mulf %170, %174 : vector<8x32xf32>
    %176 = arith.index_cast %146 : i32 to index
    %c0_48 = arith.constant 0 : index
    %177 = vector.load %arg11[%176, %c0_48] : memref<64x32xf32, #tpu.memory_space<vmem>>, vector<8x32xf32>
    tpu.vector_store %arg11[%176, %c0_48], %175 {strides = array<i32>} : memref<64x32xf32, #tpu.memory_space<vmem>>, vector<8x32xf32>,
    %c5_i32 = arith.constant 5 : i32
    %c8_i32_49 = arith.constant 8 : i32
    %178 = arith.muli %c5_i32, %c8_i32_49 : i32
    %179 = tpu.assume_multiple %178, 8 : i32
    %180 = arith.index_cast %179 : i32 to index
    %c0_50 = arith.constant 0 : index
    %181 = vector.load %arg10[%180, %c0_50] : memref<64x128xf32, #tpu.memory_space<vmem>>, vector<8x128xf32>
    %cst_51 = arith.constant dense<0.000000e+00> : vector<8x128xf32>
    %182 = tpu.matmul %175, %10, %cst_51 {dimension_numbers = #tpu.dot_dimension_numbers<[1], [0], [0], [1], [0, 0, 1, 1], [], []>} : vector<8x32xf32>, vector<32x128xf32>, vector<8x128xf32> -> vector<8x128xf32>
    %183 = arith.addf %181, %182 : vector<8x128xf32>
    %184 = vector.extract_strided_slice %183 {offsets = [0, 0], sizes = [8, 32], strides = [1, 1]} : vector<8x128xf32> to vector<8x32xf32>
    %185 = arith.negf %184 : vector<8x32xf32>
    %186 = math.exp %185 : vector<8x32xf32>
    %cst_52 = arith.constant 1.000000e+00 : f32
    %187 = vector.broadcast %cst_52 : f32 to vector<8x32xf32>
    %188 = arith.addf %187, %186 : vector<8x32xf32>
    %189 = arith.divf %187, %188 : vector<8x32xf32>
    %190 = vector.extract_strided_slice %183 {offsets = [0, 32], sizes = [8, 32], strides = [1, 1]} : vector<8x128xf32> to vector<8x32xf32>
    %191 = arith.negf %190 : vector<8x32xf32>
    %192 = math.exp %191 : vector<8x32xf32>
    %cst_53 = arith.constant 1.000000e+00 : f32
    %193 = vector.broadcast %cst_53 : f32 to vector<8x32xf32>
    %194 = arith.addf %193, %192 : vector<8x32xf32>
    %195 = arith.divf %193, %194 : vector<8x32xf32>
    %196 = vector.extract_strided_slice %183 {offsets = [0, 64], sizes = [8, 32], strides = [1, 1]} : vector<8x128xf32> to vector<8x32xf32>
    %197 = math.tanh %196 : vector<8x32xf32>
    %198 = vector.extract_strided_slice %183 {offsets = [0, 96], sizes = [8, 32], strides = [1, 1]} : vector<8x128xf32> to vector<8x32xf32>
    %199 = arith.negf %198 : vector<8x32xf32>
    %200 = math.exp %199 : vector<8x32xf32>
    %cst_54 = arith.constant 1.000000e+00 : f32
    %201 = vector.broadcast %cst_54 : f32 to vector<8x32xf32>
    %202 = arith.addf %201, %200 : vector<8x32xf32>
    %203 = arith.divf %201, %202 : vector<8x32xf32>
    %204 = arith.mulf %195, %173 : vector<8x32xf32>
    %205 = arith.mulf %189, %197 : vector<8x32xf32>
    %206 = arith.addf %204, %205 : vector<8x32xf32>
    %207 = math.tanh %206 : vector<8x32xf32>
    %208 = arith.mulf %203, %207 : vector<8x32xf32>
    %209 = arith.index_cast %179 : i32 to index
    %c0_55 = arith.constant 0 : index
    %210 = vector.load %arg11[%209, %c0_55] : memref<64x32xf32, #tpu.memory_space<vmem>>, vector<8x32xf32>
    tpu.vector_store %arg11[%209, %c0_55], %208 {strides = array<i32>} : memref<64x32xf32, #tpu.memory_space<vmem>>, vector<8x32xf32>,
    %c6_i32 = arith.constant 6 : i32
    %c8_i32_56 = arith.constant 8 : i32
    %211 = arith.muli %c6_i32, %c8_i32_56 : i32
    %212 = tpu.assume_multiple %211, 8 : i32
    %213 = arith.index_cast %212 : i32 to index
    %c0_57 = arith.constant 0 : index
    %214 = vector.load %arg10[%213, %c0_57] : memref<64x128xf32, #tpu.memory_space<vmem>>, vector<8x128xf32>
    %cst_58 = arith.constant dense<0.000000e+00> : vector<8x128xf32>
    %215 = tpu.matmul %208, %10, %cst_58 {dimension_numbers = #tpu.dot_dimension_numbers<[1], [0], [0], [1], [0, 0, 1, 1], [], []>} : vector<8x32xf32>, vector<32x128xf32>, vector<8x128xf32> -> vector<8x128xf32>
    %216 = arith.addf %214, %215 : vector<8x128xf32>
    %217 = vector.extract_strided_slice %216 {offsets = [0, 0], sizes = [8, 32], strides = [1, 1]} : vector<8x128xf32> to vector<8x32xf32>
    %218 = arith.negf %217 : vector<8x32xf32>
    %219 = math.exp %218 : vector<8x32xf32>
    %cst_59 = arith.constant 1.000000e+00 : f32
    %220 = vector.broadcast %cst_59 : f32 to vector<8x32xf32>
    %221 = arith.addf %220, %219 : vector<8x32xf32>
    %222 = arith.divf %220, %221 : vector<8x32xf32>
    %223 = vector.extract_strided_slice %216 {offsets = [0, 32], sizes = [8, 32], strides = [1, 1]} : vector<8x128xf32> to vector<8x32xf32>
    %224 = arith.negf %223 : vector<8x32xf32>
    %225 = math.exp %224 : vector<8x32xf32>
    %cst_60 = arith.constant 1.000000e+00 : f32
    %226 = vector.broadcast %cst_60 : f32 to vector<8x32xf32>
    %227 = arith.addf %226, %225 : vector<8x32xf32>
    %228 = arith.divf %226, %227 : vector<8x32xf32>
    %229 = vector.extract_strided_slice %216 {offsets = [0, 64], sizes = [8, 32], strides = [1, 1]} : vector<8x128xf32> to vector<8x32xf32>
    %230 = math.tanh %229 : vector<8x32xf32>
    %231 = vector.extract_strided_slice %216 {offsets = [0, 96], sizes = [8, 32], strides = [1, 1]} : vector<8x128xf32> to vector<8x32xf32>
    %232 = arith.negf %231 : vector<8x32xf32>
    %233 = math.exp %232 : vector<8x32xf32>
    %cst_61 = arith.constant 1.000000e+00 : f32
    %234 = vector.broadcast %cst_61 : f32 to vector<8x32xf32>
    %235 = arith.addf %234, %233 : vector<8x32xf32>
    %236 = arith.divf %234, %235 : vector<8x32xf32>
    %237 = arith.mulf %228, %206 : vector<8x32xf32>
    %238 = arith.mulf %222, %230 : vector<8x32xf32>
    %239 = arith.addf %237, %238 : vector<8x32xf32>
    %240 = math.tanh %239 : vector<8x32xf32>
    %241 = arith.mulf %236, %240 : vector<8x32xf32>
    %242 = arith.index_cast %212 : i32 to index
    %c0_62 = arith.constant 0 : index
    %243 = vector.load %arg11[%242, %c0_62] : memref<64x32xf32, #tpu.memory_space<vmem>>, vector<8x32xf32>
    tpu.vector_store %arg11[%242, %c0_62], %241 {strides = array<i32>} : memref<64x32xf32, #tpu.memory_space<vmem>>, vector<8x32xf32>,
    %c7_i32 = arith.constant 7 : i32
    %c8_i32_63 = arith.constant 8 : i32
    %244 = arith.muli %c7_i32, %c8_i32_63 : i32
    %245 = tpu.assume_multiple %244, 8 : i32
    %246 = arith.index_cast %245 : i32 to index
    %c0_64 = arith.constant 0 : index
    %247 = vector.load %arg10[%246, %c0_64] : memref<64x128xf32, #tpu.memory_space<vmem>>, vector<8x128xf32>
    %cst_65 = arith.constant dense<0.000000e+00> : vector<8x128xf32>
    %248 = tpu.matmul %241, %10, %cst_65 {dimension_numbers = #tpu.dot_dimension_numbers<[1], [0], [0], [1], [0, 0, 1, 1], [], []>} : vector<8x32xf32>, vector<32x128xf32>, vector<8x128xf32> -> vector<8x128xf32>
    %249 = arith.addf %247, %248 : vector<8x128xf32>
    %250 = vector.extract_strided_slice %249 {offsets = [0, 0], sizes = [8, 32], strides = [1, 1]} : vector<8x128xf32> to vector<8x32xf32>
    %251 = arith.negf %250 : vector<8x32xf32>
    %252 = math.exp %251 : vector<8x32xf32>
    %cst_66 = arith.constant 1.000000e+00 : f32
    %253 = vector.broadcast %cst_66 : f32 to vector<8x32xf32>
    %254 = arith.addf %253, %252 : vector<8x32xf32>
    %255 = arith.divf %253, %254 : vector<8x32xf32>
    %256 = vector.extract_strided_slice %249 {offsets = [0, 32], sizes = [8, 32], strides = [1, 1]} : vector<8x128xf32> to vector<8x32xf32>
    %257 = arith.negf %256 : vector<8x32xf32>
    %258 = math.exp %257 : vector<8x32xf32>
    %cst_67 = arith.constant 1.000000e+00 : f32
    %259 = vector.broadcast %cst_67 : f32 to vector<8x32xf32>
    %260 = arith.addf %259, %258 : vector<8x32xf32>
    %261 = arith.divf %259, %260 : vector<8x32xf32>
    %262 = vector.extract_strided_slice %249 {offsets = [0, 64], sizes = [8, 32], strides = [1, 1]} : vector<8x128xf32> to vector<8x32xf32>
    %263 = math.tanh %262 : vector<8x32xf32>
    %264 = vector.extract_strided_slice %249 {offsets = [0, 96], sizes = [8, 32], strides = [1, 1]} : vector<8x128xf32> to vector<8x32xf32>
    %265 = arith.negf %264 : vector<8x32xf32>
    %266 = math.exp %265 : vector<8x32xf32>
    %cst_68 = arith.constant 1.000000e+00 : f32
    %267 = vector.broadcast %cst_68 : f32 to vector<8x32xf32>
    %268 = arith.addf %267, %266 : vector<8x32xf32>
    %269 = arith.divf %267, %268 : vector<8x32xf32>
    %270 = arith.mulf %261, %239 : vector<8x32xf32>
    %271 = arith.mulf %255, %263 : vector<8x32xf32>
    %272 = arith.addf %270, %271 : vector<8x32xf32>
    %273 = math.tanh %272 : vector<8x32xf32>
    %274 = arith.mulf %269, %273 : vector<8x32xf32>
    %275 = arith.index_cast %245 : i32 to index
    %c0_69 = arith.constant 0 : index
    %276 = vector.load %arg11[%275, %c0_69] : memref<64x32xf32, #tpu.memory_space<vmem>>, vector<8x32xf32>
    tpu.vector_store %arg11[%275, %c0_69], %274 {strides = array<i32>} : memref<64x32xf32, #tpu.memory_space<vmem>>, vector<8x32xf32>,
    %c8_i32_70 = arith.constant 8 : i32
    %c0_71 = arith.constant 0 : index
    %c0_72 = arith.constant 0 : index
    %277 = vector.load %arg8[%c0_71, %c0_72] : memref<8x32xf32, #tpu.memory_space<vmem>>, vector<8x32xf32>
    tpu.vector_store %arg8[%c0_71, %c0_72], %274 {strides = array<i32>} : memref<8x32xf32, #tpu.memory_space<vmem>>, vector<8x32xf32>,
    %c0_73 = arith.constant 0 : index
    %c0_74 = arith.constant 0 : index
    %278 = vector.load %arg9[%c0_73, %c0_74] : memref<8x32xf32, #tpu.memory_space<vmem>>, vector<8x32xf32>
    tpu.vector_store %arg9[%c0_73, %c0_74], %272 {strides = array<i32>} : memref<8x32xf32, #tpu.memory_space<vmem>>, vector<8x32xf32>,
    %c0_75 = arith.constant 0 : index
    %c0_76 = arith.constant 0 : index
    %279 = vector.load %arg11[%c0_75, %c0_76] : memref<64x32xf32, #tpu.memory_space<vmem>>, vector<64x32xf32>
    %c0_77 = arith.constant 0 : index
    %c0_78 = arith.constant 0 : index
    %280 = vector.load %arg5[%c0_77, %c0_78] : memref<32x8xf32, #tpu.memory_space<vmem>>, vector<32x8xf32>
    %cst_79 = arith.constant dense<0.000000e+00> : vector<64x8xf32>
    %281 = tpu.matmul %279, %280, %cst_79 {dimension_numbers = #tpu.dot_dimension_numbers<[1], [0], [0], [1], [0, 0, 1, 1], [], []>} : vector<64x32xf32>, vector<32x8xf32>, vector<64x8xf32> -> vector<64x8xf32>
    %c0_80 = arith.constant 0 : index
    %c0_81 = arith.constant 0 : index
    %282 = vector.load %arg6[%c0_80, %c0_81] : memref<1x8xf32, #tpu.memory_space<vmem>>, vector<1x8xf32>
    %283 = vector.broadcast %282 : vector<1x8xf32> to vector<64x8xf32>
    %284 = arith.addf %281, %283 : vector<64x8xf32>
    %c0_82 = arith.constant 0 : index
    %c0_83 = arith.constant 0 : index
    %285 = vector.load %arg7[%c0_82, %c0_83] : memref<64x8xf32, #tpu.memory_space<vmem>>, vector<64x8xf32>
    tpu.vector_store %arg7[%c0_82, %c0_83], %284 {strides = array<i32>} : memref<64x8xf32, #tpu.memory_space<vmem>>, vector<64x8xf32>,
    return
  }
  func.func @transform_0(%arg0: i32) -> (i32, i32) {
    %c0_i32 = arith.constant 0 : i32
    %c0_i32_0 = arith.constant 0 : i32
    return %arg0, %c0_i32 : i32, i32
  }
  func.func @transform_1(%arg0: i32) -> (i32, i32) {
    %c0_i32 = arith.constant 0 : i32
    %c0_i32_0 = arith.constant 0 : i32
    %c0_i32_1 = arith.constant 0 : i32
    return %c0_i32, %c0_i32_0 : i32, i32
  }
  func.func @transform_2(%arg0: i32) -> (i32, i32) {
    %c0_i32 = arith.constant 0 : i32
    %c0_i32_0 = arith.constant 0 : i32
    %c0_i32_1 = arith.constant 0 : i32
    return %c0_i32, %c0_i32_0 : i32, i32
  }
  func.func @transform_3(%arg0: i32) -> (i32, i32) {
    %c0_i32 = arith.constant 0 : i32
    %c0_i32_0 = arith.constant 0 : i32
    %c0_i32_1 = arith.constant 0 : i32
    return %c0_i32, %c0_i32_0 : i32, i32
  }
  func.func @transform_4(%arg0: i32) -> (i32, i32) {
    %c0_i32 = arith.constant 0 : i32
    %c0_i32_0 = arith.constant 0 : i32
    %c0_i32_1 = arith.constant 0 : i32
    return %c0_i32, %c0_i32_0 : i32, i32
  }
  func.func @transform_5(%arg0: i32) -> (i32, i32) {
    %c0_i32 = arith.constant 0 : i32
    %c0_i32_0 = arith.constant 0 : i32
    %c0_i32_1 = arith.constant 0 : i32
    return %c0_i32, %c0_i32_0 : i32, i32
  }
  func.func @transform_6(%arg0: i32) -> (i32, i32) {
    %c0_i32 = arith.constant 0 : i32
    %c0_i32_0 = arith.constant 0 : i32
    return %arg0, %c0_i32 : i32, i32
  }
}

</mosaic_0001>

<bundles_post_ra>
// kernel: tpu_custom_call.1
= control target key start
LH: loop header
LB: loop body
LE: loop exit
PB: predicated region body
PF: predicated region fallthrough
CT: control target
= control target key end

     0   :  { %vm47_vm0 = vcmask 130048   ;;  %vm27_vm1 = vcmask 261120   ;;  %v1495_v3 = vmov 0.0   ;;  %vm1496_vm2 = vmmov 0   ;;  %s1497_s21 = smov 64   ;;  %s1498_s22 = smov 32   ;;  %s1822_s1 = inlined_call_operand.vmem [shape: f32[16,128], index: 1, kind: input, shape index: {}]   ;;  %s1823_s0 = inlined_call_operand.vmem [shape: f32[64,16], index: 0, kind: input, shape index: {}]   ;;  %s1824_s2 = inlined_call_operand.vmem [shape: f32[32,128], index: 2, kind: input, shape index: {}]   ;;  %s1825_s3 = inlined_call_operand.vmem [shape: f32[1,128], index: 3, kind: input, shape index: {}]   ;;  %s1826_s4 = inlined_call_operand.vmem [shape: f32[32,8], index: 4, kind: input, shape index: {}]   ;;  %s1827_s5 = inlined_call_operand.vmem [shape: f32[1,8], index: 5, kind: input, shape index: {}]   ;;  %s1828_s6 = inlined_call_operand.vmem [shape: f32[64,8], index: 6, kind: output, shape index: {}]  }
   0x1   :  { %v39_v0 = vld [vmem:[%s1822_s1 + $0x8] sm:$0xff]  ;;  %v38_v1 = vld [vmem:[%s1822_s1] sm:$0xff]  ;;  %28 = vst.msk [vmem:[#allocation2] sm:$0xff] %vm27_vm1, %v1495_v3  ;;  %29 = vst.msk [vmem:[#allocation3] sm:$0xff] %vm27_vm1, %v1495_v3  ;;  %vm1189_vm3 = vcmask 64512  }
   0x2   :  { %v34_v2 = vld [vmem:[%s1823_s0 + $0x20] sm:$0xff]  ;;  %1422 = vmatprep.subr.mxu1 %v39_v0  ;;  %1298 = vmatprep.subr.mxu0 %v39_v0  ;;  %v35_v4 = vld [vmem:[%s1823_s0 + $0x28] sm:$0xff]  ;;  %v1555_v5 = vld [vmem:[%s1824_s2 + $0x18] sm:$0xff] }
   0x3   :  { %1424 = vmatpush3.msra.mxu1 %v39_v0  ;;  %1308 = vmatprep.mubr.msk.f32.mxu1 %vm47_vm0, %v34_v2  ;;  %v30_v6 = vld [vmem:[%s1823_s0] sm:$0xff]  ;;  %v31_v7 = vld [vmem:[%s1823_s0 + $0x8] sm:$0xff]  ;;  %v36_v8 = vld [vmem:[%s1823_s0 + $0x30] sm:$0xff] }
   0x4   :  { %1423 = vmatprep.subr.mxu1 %v38_v1  ;;  %1299 = vmatpush3.msra.mxu0 %v39_v0  ;;  %v1572_v9 = vld [vmem:[%s1824_s2 + $0x10] sm:$0xff]  ;;  %v37_v10 = vld [vmem:[%s1823_s0 + $0x38] sm:$0xff]  ;;  %v1584_v11 = vld [vmem:[%s1824_s2 + $0x8] sm:$0xff] }
   0x5   :  { %1425 = vmatpush3.msra.mxu1 %v38_v1  ;;  %1300 = vmatprep.subr.mxu0 %v38_v1  ;;  %v1593_v12 = vld [vmem:[%s1824_s2] sm:$0xff]  ;;  %v32_v55 = vld [vmem:[%s1823_s0 + $0x10] sm:$0xff]  ;;  %v33_v56 = vld [vmem:[%s1823_s0 + $0x18] sm:$0xff]  ;;  %s1499_s2 = smov 96  }
   0x6   :  { %1309 = vmatmul.mubr.msk.f32.vlgmr.msra.gmra.mxu1 %vm47_vm0, %v35_v4  ;;  %1314 = vmatprep.subr.mxu1 %v1495_v3  ;;  %v1629_v19 = vld [vmem:[%s1825_s3] ss:$0 sm:$0xff] }
   0x7   :  { %1315 = vmatpush3.msra.mxu1 %v1555_v5  ;;  %1301 = vmatpush3.msra.mxu0 %v38_v1 }
   0x8   :  { %1302 = vmatprep.mubr.msk.f32.mxu0 %vm47_vm0, %v30_v6  ;;  %1316 = vmatprep.subr.mxu1 %v1495_v3  ;;  %v189_v13 = vld [vmem:[#allocation2] sm:$0xff]  ;;  %v190_v26 = vld [vmem:[#allocation3] sm:$0xff] }
   0x9   :  { %1303 = vmatmul.mubr.msk.f32.vlgmr.msra.gmra.mxu0 %vm47_vm0, %v31_v7  ;;  %1311 = vmatprep.mubr.msk.f32.mxu1 %vm47_vm0, %v36_v8 }
   0xa   :  { %1317 = vmatpush3.msra.mxu1 %v1572_v9  ;;  %1336 = vmatprep.subr.mxu0 %v1495_v3 }
   0xb   :  { %1312 = vmatmul.mubr.msk.f32.gmra.mxu1 %vm47_vm0, %v37_v10  ;;  %1318 = vmatprep.subr.mxu1 %v1495_v3 }
   0xc   :  { %1319 = vmatpush3.msra.mxu1 %v1584_v11  ;;  %1322 = vmatprep.mubr.msk.f32.mxu1 %vm1496_vm2, %v1495_v3 }
   0xd   :  { %1320 = vmatprep.subr.mxu1 %v1495_v3  ;;  %1337 = vmatpush3.msra.mxu0 %v1555_v5 }
   0xe   :  { %1321 = vmatpush3.msra.mxu1 %v1593_v12  ;;  %1338 = vmatprep.subr.mxu0 %v1495_v3 }
   0xf   :  { %1323 = vmatmul.mubr.msk.f32.vlgmr.msra.gmra.mxu1 %vm27_vm1, %v189_v13  ;;  %1325 = vmatprep.subr.mxu1 %v1495_v3 }
  0x10   :  { %1326 = vmatpush3.msra.mxu1 %v1555_v5  ;;  %1333 = vmatprep.mubr.msk.f32.mxu1 %vm1496_vm2, %v1495_v3 }
  0x11   :  { %1327 = vmatprep.subr.mxu1 %v1495_v3  ;;  %1339 = vmatpush3.msra.mxu0 %v1572_v9 }
  0x12   :  { %1328 = vmatpush3.msra.mxu1 %v1572_v9  ;;  %1340 = vmatprep.subr.mxu0 %v1495_v3 }
  0x13   :  { %1329 = vmatprep.subr.mxu1 %v1495_v3  ;;  %1341 = vmatpush3.msra.mxu0 %v1584_v11 }
  0x14   :  { %1330 = vmatpush3.msra.mxu1 %v1584_v11  ;;  %1342 = vmatprep.subr.mxu0 %v1495_v3 }
  0x15   :  { %1331 = vmatprep.subr.mxu1 %v1495_v3  ;;  %1343 = vmatpush3.msra.mxu0 %v1593_v12 }
  0x16   :  { %1332 = vmatpush3.msra.mxu1 %v1593_v12  ;;  %1358 = vmatprep.subr.mxu0 %v1495_v3 }
  0x17   :  { %1347 = vmatprep.subr.mxu1 %v1495_v3  ;;  %1305 = vmatprep.mubr.msk.f32.mxu0 %vm47_vm0, %v32_v55 }
  0x18   :  { %1306 = vmatmul.mubr.msk.f32.gmra.mxu0 %vm47_vm0, %v33_v56 }
  0x19   :  { %1344 = vmatprep.mubr.msk.f32.mxu0 %vm1496_vm2, %v1495_v3 }
  0xc6   :  { %v1620_v14 = vpop.f32.mrf.mxu1 }
  0xc8   :  { %v1622_v15 = vpop.f32.mrf.mxu1 }
  0xc9   :  { %v1304_v16 = vpop.f32.mrf.mxu0 }
  0xca   :  { %v144_v41 = vadd.f32 %v1304_v16, %v1629_v19 }
  0xcb   :  { %v1624_v17 = vpop.f32.mrf.mxu1  ;;  %v138_v18 = vpop.f32.mrf.mxu0 }
  0xcc   :  { %v139_v21 = vadd.f32 %v1629_v19, %v138_v18 }
  0xcd   :  { %v1631_v20 = vpop.f32.mrf.mxu1 }
  0xcf   :  { %v262_v22 = vpop.f32.mrf.mxu1 }
  0xd0   :  { %v266_v23 = vadd.f32 %v262_v22, %v139_v21 }
  0xd1   :  { %v1324_v24 = vpop.f32.mrf.mxu1 }
  0xd2   :  { %1431 = vtanh.f32 %v266_v23  ;;  %v1212_v27 = vmul.f32 -1.442695, %v266_v23 }
  0xd4   :  { %1433 = vpow2.f32 %v1212_v27 }
  0xd8   :  { %v1307_v61 = vpop.f32.mrf.mxu0 }
  0xd9   :  { %v154_v27 = vadd.f32 %v1307_v61, %v1629_v19 }
  0xda   :  { %v148_v62 = vpop.f32.mrf.mxu0 }
  0xdb   :  { %v149_v63 = vadd.f32 %v1629_v19, %v148_v62  ;;  %v164_v62 = vadd.f32 %v1620_v14, %v1629_v19 }
  0xdf   :  { %v1432_v25 = vpop.eup %1431 }
  0xe0   :  { %280 = vrot.lane.b32.xlu0 %v1432_v25, %s1497_s21 }
  0xe1   :  { %v1434_v28 = vpop.eup %1433 }
  0xe2   :  { %v270_v29 = vadd.f32 1.0, %v1434_v28 }
  0xe4   :  { %275 = vrot.lane.b32.xlu0 %v190_v26, %s1498_s22  ;;  %1435 = vrcp.f32 %v270_v29 }
  0xf1   :  { %v1436_v30 = vpop.eup %1435 }
 0x152   :  { %v281_v31 = vpop.permute.xlu0 %280 }
 0x153   :  { %v283_v32 = vmul.f32 %v1436_v30, %v281_v31 }
 0x155   :  { %285 = vrot.lane.b32.xlu1 %v283_v32, %s1498_s22 }
 0x156   :  { %v276_v33 = vpop.permute.xlu0 %275 }
 0x157   :  { %v278_v34 = vmul.f32 %v1436_v30, %v276_v33 }
 0x1c7   :  { %v286_v35 = vpop.permute.xlu1 %285 }
 0x1c8   :  { %v288_v36 = vadd.f32 %v286_v35, %v278_v34 }
 0x1ca   :  { %1437 = vtanh.f32 %v288_v36 }
 0x1d7   :  { %v1438_v37 = vpop.eup %1437 }
 0x1d8   :  { %291 = vrot.lane.b32.xlu1 %v1438_v37, %s1497_s21 }
 0x24a   :  { %v292_v38 = vpop.permute.xlu1 %291 }
 0x24b   :  { %v294_v39 = vmul.f32 %v1436_v30, %v292_v38 }
 0x24d   :  { %296 = vrot.lane.b32.xlu0 %v294_v39, %s1498_s22 }
 0x2bf   :  { %v297_v40 = vpop.permute.xlu0 %296 }
 0x2c0   :  { %299 = vst.msk [vmem:[#allocation5] sm:$0xff] %vm27_vm1, %v297_v40  ;;  %1334 = vmatmul.mubr.msk.f32.vlgmr.msra.gmra.mxu1 %vm27_vm1, %v297_v40 }
 0x2c1   :  { %1348 = vmatpush3.msra.mxu1 %v1555_v5  ;;  %1355 = vmatprep.mubr.msk.f32.mxu1 %vm1496_vm2, %v1495_v3 }
 0x2c2   :  { %1349 = vmatprep.subr.mxu1 %v1495_v3 }
 0x2c3   :  { %1350 = vmatpush3.msra.mxu1 %v1572_v9 }
 0x2c4   :  { %1351 = vmatprep.subr.mxu1 %v1495_v3 }
 0x2c5   :  { %1352 = vmatpush3.msra.mxu1 %v1584_v11 }
 0x2c6   :  { %1353 = vmatprep.subr.mxu1 %v1495_v3 }
 0x2c7   :  { %1354 = vmatpush3.msra.mxu1 %v1593_v12 }
 0x2c8   :  { %1369 = vmatprep.subr.mxu1 %v1495_v3 }
 0x380   :  { %v370_v42 = vpop.f32.mrf.mxu1 }
 0x381   :  { %v374_v43 = vadd.f32 %v370_v42, %v144_v41 }
 0x382   :  { %v1335_v44 = vpop.f32.mrf.mxu1 }
 0x383   :  { %1439 = vtanh.f32 %v374_v43  ;;  %v1214_v46 = vmul.f32 -1.442695, %v374_v43 }
 0x385   :  { %1441 = vpow2.f32 %v1214_v46 }
 0x390   :  { %v1440_v45 = vpop.eup %1439 }
 0x391   :  { %384 = vrot.lane.b32.xlu1 %v1440_v45, %s1497_s21  ;;  %v159_v45 = vadd.f32 %v1629_v19, %v1622_v15 }
 0x392   :  { %v1442_v47 = vpop.eup %1441 }
 0x393   :  { %v378_v48 = vadd.f32 1.0, %v1442_v47 }
 0x395   :  { %1443 = vrcp.f32 %v378_v48 }
 0x3a2   :  { %v1444_v49 = vpop.eup %1443 }
 0x3a3   :  { %v382_v52 = vmul.f32 %v1444_v49, %v288_v36 }
 0x403   :  { %v385_v50 = vpop.permute.xlu1 %384 }
 0x404   :  { %v387_v51 = vmul.f32 %v1444_v49, %v385_v50 }
 0x406   :  { %389 = vrot.lane.b32.xlu0 %v387_v51, %s1498_s22 }
 0x478   :  { %v390_v53 = vpop.permute.xlu0 %389 }
 0x479   :  { %v392_v54 = vadd.f32 %v390_v53, %v382_v52 }
 0x47b   :  { %1445 = vtanh.f32 %v392_v54 }
 0x488   :  { %v1446_v57 = vpop.eup %1445 }
 0x489   :  { %395 = vrot.lane.b32.xlu1 %v1446_v57, %s1497_s21 }
 0x4fb   :  { %v396_v58 = vpop.permute.xlu1 %395 }
 0x4fc   :  { %v398_v59 = vmul.f32 %v1444_v49, %v396_v58 }
 0x4fe   :  { %400 = vrot.lane.b32.xlu0 %v398_v59, %s1498_s22 }
 0x570   :  { %v401_v60 = vpop.permute.xlu0 %400 }
 0x571   :  { %404 = vst.msk [vmem:[#allocation5 + $0x8] sm:$0xff] %vm27_vm1, %v401_v60  ;;  %1345 = vmatmul.mubr.msk.f32.vlgmr.msra.gmra.mxu0 %vm27_vm1, %v401_v60 }
 0x572   :  { %1359 = vmatpush3.msra.mxu0 %v1555_v5  ;;  %1366 = vmatprep.mubr.msk.f32.mxu0 %vm1496_vm2, %v1495_v3 }
 0x573   :  { %1360 = vmatprep.subr.mxu0 %v1495_v3 }
 0x574   :  { %1361 = vmatpush3.msra.mxu0 %v1572_v9 }
 0x575   :  { %1362 = vmatprep.subr.mxu0 %v1495_v3 }
 0x576   :  { %1363 = vmatpush3.msra.mxu0 %v1584_v11 }
 0x577   :  { %1364 = vmatprep.subr.mxu0 %v1495_v3 }
 0x578   :  { %1365 = vmatpush3.msra.mxu0 %v1593_v12 }
 0x579   :  { %1380 = vmatprep.subr.mxu0 %v1495_v3 }
 0x631   :  { %v475_v0 = vpop.f32.mrf.mxu0 }
 0x632   :  { %v479_v1 = vadd.f32 %v475_v0, %v149_v63 }
 0x633   :  { %v1346_v2 = vpop.f32.mrf.mxu0 }
 0x634   :  { %1447 = vtanh.f32 %v479_v1  ;;  %v1216_v6 = vmul.f32 -1.442695, %v479_v1 }
 0x636   :  { %1449 = vpow2.f32 %v1216_v6 }
 0x641   :  { %v1448_v4 = vpop.eup %1447 }
 0x642   :  { %489 = vrot.lane.b32.xlu1 %v1448_v4, %s1497_s21 }
 0x643   :  { %v1450_v7 = vpop.eup %1449 }
 0x644   :  { %v483_v8 = vadd.f32 1.0, %v1450_v7 }
 0x646   :  { %1451 = vrcp.f32 %v483_v8  ;;  %v1052_v8 = vld [vmem:[%s1826_s4 + $0x18] sm:$0xff] }
 0x653   :  { %v1452_v10 = vpop.eup %1451 }
 0x654   :  { %v487_v18 = vmul.f32 %v1452_v10, %v392_v54 }
 0x6b4   :  { %v490_v13 = vpop.permute.xlu1 %489 }
 0x6b5   :  { %v492_v16 = vmul.f32 %v1452_v10, %v490_v13 }
 0x6b7   :  { %494 = vrot.lane.b32.xlu0 %v492_v16, %s1498_s22 }
 0x729   :  { %v495_v21 = vpop.permute.xlu0 %494 }
 0x72a   :  { %v497_v22 = vadd.f32 %v495_v21, %v487_v18  ;;  %v1051_v21 = vld [vmem:[%s1826_s4 + $0x10] sm:$0xff] }
 0x72c   :  { %1453 = vtanh.f32 %v497_v22 }
 0x739   :  { %v1454_v23 = vpop.eup %1453 }
 0x73a   :  { %500 = vrot.lane.b32.xlu1 %v1454_v23, %s1497_s21  ;;  %v1050_v23 = vld [vmem:[%s1826_s4 + $0x8] sm:$0xff] }
 0x7ac   :  { %v501_v24 = vpop.permute.xlu1 %500 }
 0x7ad   :  { %v503_v25 = vmul.f32 %v1452_v10, %v501_v24  ;;  %v1049_v24 = vld [vmem:[%s1826_s4] sm:$0xff] }
 0x7af   :  { %505 = vrot.lane.b32.xlu0 %v503_v25, %s1498_s22  ;;  %v1042_v25 = vld [vmem:[#allocation5 + $0x8] sm:$0xff] }
 0x821   :  { %v506_v26 = vpop.permute.xlu0 %505 }
 0x822   :  { %509 = vst.msk [vmem:[#allocation5 + $0x10] sm:$0xff] %vm27_vm1, %v506_v26  ;;  %1356 = vmatmul.mubr.msk.f32.vlgmr.msra.gmra.mxu1 %vm27_vm1, %v506_v26 }
 0x823   :  { %1370 = vmatpush3.msra.mxu1 %v1555_v5  ;;  %1377 = vmatprep.mubr.msk.f32.mxu1 %vm1496_vm2, %v1495_v3 }
 0x824   :  { %1371 = vmatprep.subr.mxu1 %v1495_v3 }
 0x825   :  { %1372 = vmatpush3.msra.mxu1 %v1572_v9 }
 0x826   :  { %1373 = vmatprep.subr.mxu1 %v1495_v3 }
 0x827   :  { %1374 = vmatpush3.msra.mxu1 %v1584_v11 }
 0x828   :  { %1375 = vmatprep.subr.mxu1 %v1495_v3 }
 0x829   :  { %1376 = vmatpush3.msra.mxu1 %v1593_v12  ;;  %v1043_v26 = vld [vmem:[#allocation5 + $0x10] sm:$0xff] }
 0x82a   :  { %1391 = vmatprep.subr.mxu1 %v1495_v3 }
 0x8e2   :  { %v580_v28 = vpop.f32.mrf.mxu1 }
 0x8e3   :  { %v584_v29 = vadd.f32 %v580_v28, %v154_v27 }
 0x8e4   :  { %v1357_v30 = vpop.f32.mrf.mxu1 }
 0x8e5   :  { %1455 = vtanh.f32 %v584_v29  ;;  %v1218_v32 = vmul.f32 -1.442695, %v584_v29  ;;  %v169_v30 = vadd.f32 %v1629_v19, %v1631_v20 }
 0x8e7   :  { %1457 = vpow2.f32 %v1218_v32 }
 0x8f2   :  { %v1456_v31 = vpop.eup %1455 }
 0x8f3   :  { %594 = vrot.lane.b32.xlu1 %v1456_v31, %s1497_s21 }
 0x8f4   :  { %v1458_v33 = vpop.eup %1457 }
 0x8f5   :  { %v588_v34 = vadd.f32 1.0, %v1458_v33 }
 0x8f7   :  { %1459 = vrcp.f32 %v588_v34  ;;  %v1762_v34 = vld [vmem:[%s1827_s5] ss:$0 sm:$0xff] }
 0x904   :  { %v1460_v35 = vpop.eup %1459 }
 0x905   :  { %v592_v38 = vmul.f32 %v1460_v35, %v497_v22  ;;  %v1041_v22 = vld [vmem:[#allocation5] sm:$0xff] }
 0x965   :  { %v595_v36 = vpop.permute.xlu1 %594 }
 0x966   :  { %v597_v37 = vmul.f32 %v1460_v35, %v595_v36 }
 0x968   :  { %599 = vrot.lane.b32.xlu0 %v597_v37, %s1498_s22 }
 0x9da   :  { %v600_v39 = vpop.permute.xlu0 %599 }
 0x9db   :  { %v602_v40 = vadd.f32 %v600_v39, %v592_v38 }
 0x9dd   :  { %1461 = vtanh.f32 %v602_v40 }
 0x9ea   :  { %v1462_v41 = vpop.eup %1461 }
 0x9eb   :  { %605 = vrot.lane.b32.xlu1 %v1462_v41, %s1497_s21 }
 0xa5d   :  { %v606_v42 = vpop.permute.xlu1 %605 }
 0xa5e   :  { %v608_v43 = vmul.f32 %v1460_v35, %v606_v42 }
 0xa60   :  { %610 = vrot.lane.b32.xlu0 %v608_v43, %s1498_s22 }
 0xad2   :  { %v611_v44 = vpop.permute.xlu0 %610 }
 0xad3   :  { %614 = vst.msk [vmem:[#allocation5 + $0x18] sm:$0xff] %vm27_vm1, %v611_v44  ;;  %1367 = vmatmul.mubr.msk.f32.vlgmr.msra.gmra.mxu0 %vm27_vm1, %v611_v44 }
 0xad4   :  { %1381 = vmatpush3.msra.mxu0 %v1555_v5  ;;  %1388 = vmatprep.mubr.msk.f32.mxu0 %vm1496_vm2, %v1495_v3 }
 0xad5   :  { %1382 = vmatprep.subr.mxu0 %v1495_v3 }
 0xad6   :  { %1383 = vmatpush3.msra.mxu0 %v1572_v9 }
 0xad7   :  { %1384 = vmatprep.subr.mxu0 %v1495_v3 }
 0xad8   :  { %1385 = vmatpush3.msra.mxu0 %v1584_v11 }
 0xad9   :  { %1386 = vmatprep.subr.mxu0 %v1495_v3 }
 0xada   :  { %1387 = vmatpush3.msra.mxu0 %v1593_v12  ;;  %v1044_v27 = vld [vmem:[#allocation5 + $0x18] sm:$0xff] }
 0xadb   :  { %1402 = vmatprep.subr.mxu0 %v1052_v8 }
 0xb93   :  { %v685_v46 = vpop.f32.mrf.mxu0 }
 0xb94   :  { %v689_v47 = vadd.f32 %v685_v46, %v159_v45 }
 0xb95   :  { %v1368_v48 = vpop.f32.mrf.mxu0 }
 0xb96   :  { %1463 = vtanh.f32 %v689_v47  ;;  %v1220_v50 = vmul.f32 -1.442695, %v689_v47 }
 0xb98   :  { %1465 = vpow2.f32 %v1220_v50 }
 0xba3   :  { %v1464_v49 = vpop.eup %1463 }
 0xba4   :  { %699 = vrot.lane.b32.xlu1 %v1464_v49, %s1497_s21 }
 0xba5   :  { %v1466_v51 = vpop.eup %1465 }
 0xba6   :  { %v693_v52 = vadd.f32 1.0, %v1466_v51 }
 0xba8   :  { %1467 = vrcp.f32 %v693_v52 }
 0xbb5   :  { %v1468_v53 = vpop.eup %1467 }
 0xbb6   :  { %v697_v56 = vmul.f32 %v1468_v53, %v602_v40 }
 0xc16   :  { %v700_v54 = vpop.permute.xlu1 %699 }
 0xc17   :  { %v702_v55 = vmul.f32 %v1468_v53, %v700_v54 }
 0xc19   :  { %704 = vrot.lane.b32.xlu0 %v702_v55, %s1498_s22 }
 0xc8b   :  { %v705_v57 = vpop.permute.xlu0 %704 }
 0xc8c   :  { %v707_v15 = vadd.f32 %v705_v57, %v697_v56 }
 0xc8e   :  { %1469 = vtanh.f32 %v707_v15 }
 0xc9b   :  { %v1470_v58 = vpop.eup %1469 }
 0xc9c   :  { %710 = vrot.lane.b32.xlu1 %v1470_v58, %s1497_s21 }
 0xd0e   :  { %v711_v59 = vpop.permute.xlu1 %710 }
 0xd0f   :  { %v713_v60 = vmul.f32 %v1468_v53, %v711_v59 }
 0xd11   :  { %715 = vrot.lane.b32.xlu0 %v713_v60, %s1498_s22  ;;  %v174_v60 = vadd.f32 %v1624_v17, %v1629_v19 }
 0xd83   :  { %v716_v61 = vpop.permute.xlu0 %715 }
 0xd84   :  { %719 = vst.msk [vmem:[#allocation5 + $0x20] sm:$0xff] %vm27_vm1, %v716_v61  ;;  %1378 = vmatmul.mubr.msk.f32.vlgmr.msra.gmra.mxu1 %vm27_vm1, %v716_v61 }
 0xd85   :  { %1392 = vmatpush3.msra.mxu1 %v1555_v5  ;;  %1399 = vmatprep.mubr.msk.f32.mxu1 %vm1496_vm2, %v1495_v3 }
 0xd86   :  { %1393 = vmatprep.subr.mxu1 %v1495_v3 }
 0xd87   :  { %1394 = vmatpush3.msra.mxu1 %v1572_v9 }
 0xd88   :  { %1395 = vmatprep.subr.mxu1 %v1495_v3 }
 0xd89   :  { %1396 = vmatpush3.msra.mxu1 %v1584_v11 }
 0xd8a   :  { %1397 = vmatprep.subr.mxu1 %v1495_v3 }
 0xd8b   :  { %1398 = vmatpush3.msra.mxu1 %v1593_v12  ;;  %v1045_v28 = vld [vmem:[#allocation5 + $0x20] sm:$0xff] }
 0xe44   :  { %v790_v63 = vpop.f32.mrf.mxu1 }
 0xe45   :  { %v794_v5 = vadd.f32 %v790_v63, %v164_v62 }
 0xe46   :  { %v1379_v0 = vpop.f32.mrf.mxu1 }
 0xe47   :  { %1471 = vtanh.f32 %v794_v5  ;;  %v1222_v2 = vmul.f32 -1.442695, %v794_v5 }
 0xe49   :  { %1473 = vpow2.f32 %v1222_v2 }
 0xe54   :  { %v1472_v1 = vpop.eup %1471 }
 0xe55   :  { %804 = vrot.lane.b32.xlu1 %v1472_v1, %s1497_s21 }
 0xe56   :  { %v1474_v9 = vpop.eup %1473 }
 0xe57   :  { %v798_v4 = vadd.f32 1.0, %v1474_v9 }
 0xe59   :  { %1475 = vrcp.f32 %v798_v4 }
 0xe66   :  { %v1476_v11 = vpop.eup %1475 }
 0xe67   :  { %v802_v12 = vmul.f32 %v1476_v11, %v707_v15 }
 0xec7   :  { %v805_v6 = vpop.permute.xlu1 %804 }
 0xec8   :  { %v807_v3 = vmul.f32 %v1476_v11, %v805_v6 }
 0xeca   :  { %809 = vrot.lane.b32.xlu0 %v807_v3, %s1498_s22 }
 0xf3c   :  { %v810_v7 = vpop.permute.xlu0 %809 }
 0xf3d   :  { %v1732_v14 = vadd.f32 %v810_v7, %v802_v12 }
 0xf3f   :  { %1477 = vtanh.f32 %v1732_v14 }
 0xf4c   :  { %v1478_v10 = vpop.eup %1477 }
 0xf4d   :  { %815 = vrot.lane.b32.xlu1 %v1478_v10, %s1497_s21 }
 0xfbf   :  { %v816_v13 = vpop.permute.xlu1 %815 }
 0xfc0   :  { %v818_v16 = vmul.f32 %v1476_v11, %v816_v13 }
 0xfc2   :  { %820 = vrot.lane.b32.xlu0 %v818_v16, %s1498_s22 }
0x1034   :  { %v821_v18 = vpop.permute.xlu0 %820 }
0x1035   :  { %824 = vst.msk [vmem:[#allocation5 + $0x28] sm:$0xff] %vm27_vm1, %v821_v18  ;;  %1389 = vmatmul.mubr.msk.f32.vlgmr.msra.gmra.mxu0 %vm27_vm1, %v821_v18 }
0x1036   :  { %1403 = vmatpush3.msra.mxu0 %v1052_v8  ;;  %1410 = vmatprep.mubr.msk.f32.mxu0 %vm27_vm1, %v1041_v22 }
0x1037   :  { %1404 = vmatprep.subr.mxu0 %v1051_v21 }
0x1038   :  { %1405 = vmatpush3.msra.mxu0 %v1051_v21 }
0x1039   :  { %1406 = vmatprep.subr.mxu0 %v1050_v23 }
0x103a   :  { %1407 = vmatpush3.msra.mxu0 %v1050_v23 }
0x103b   :  { %1408 = vmatprep.subr.mxu0 %v1049_v24 }
0x103c   :  { %1409 = vmatpush3.msra.mxu0 %v1049_v24  ;;  %v1046_v29 = vld [vmem:[#allocation5 + $0x28] sm:$0xff] }
0x103d   :  { %1411 = vmatmul.mubr.msk.f32.vlgmr.msra.gmra.mxu0 %vm27_vm1, %v1042_v25 }
0x103e   :  { %1413 = vmatprep.mubr.msk.f32.mxu0 %vm27_vm1, %v1043_v26 }
0x1041   :  { %1414 = vmatmul.mubr.msk.f32.gmra.mxu0 %vm27_vm1, %v1044_v27 }
0x1042   :  { %1416 = vmatprep.mubr.msk.f32.mxu0 %vm27_vm1, %v1045_v28 }
0x1045   :  { %1417 = vmatmul.mubr.msk.f32.gmra.mxu0 %vm27_vm1, %v1046_v29 }
0x10f5   :  { %v895_v31 = vpop.f32.mrf.mxu0 }
0x10f6   :  { %v899_v32 = vadd.f32 %v895_v31, %v169_v30 }
0x10f7   :  { %v1390_v33 = vpop.f32.mrf.mxu0 }
0x10f8   :  { %1479 = vtanh.f32 %v899_v32  ;;  %v1224_v47 = vmul.f32 -1.442695, %v899_v32 }
0x10fa   :  { %1481 = vpow2.f32 %v1224_v47 }
0x10fd   :  { %v1412_v35 = vpop.f32.mrf.mxu0 }
0x10fe   :  { %v1156_v36 = vadd.f32 %v1412_v35, %v1762_v34 }
0x10ff   :  { %v1150_v37 = vpop.f32.mrf.mxu0 }
0x1100   :  { %1191 = vst.msk [vmem:[%s1828_s6 + $0x8] sm:$0xff] %vm1189_vm3, %v1156_v36  ;;  %v1151_v20 = vadd.f32 %v1762_v34, %v1150_v37 }
0x1101   :  { %v1415_v38 = vpop.f32.mrf.mxu0 }
0x1102   :  { %1190 = vst.msk [vmem:[%s1828_s6] sm:$0xff] %vm1189_vm3, %v1151_v20  ;;  %v1166_v39 = vadd.f32 %v1415_v38, %v1762_v34 }
0x1103   :  { %v1160_v40 = vpop.f32.mrf.mxu0 }
0x1104   :  { %1193 = vst.msk [vmem:[%s1828_s6 + $0x18] sm:$0xff] %vm1189_vm3, %v1166_v39  ;;  %v1161_v41 = vadd.f32 %v1762_v34, %v1160_v40 }
0x1105   :  { %v1480_v42 = vpop.eup %1479  ;;  %v1418_v43 = vpop.f32.mrf.mxu0 }
0x1106   :  { %1192 = vst.msk [vmem:[%s1828_s6 + $0x10] sm:$0xff] %vm1189_vm3, %v1161_v41  ;;  %v1176_v44 = vadd.f32 %v1418_v43, %v1762_v34  ;;  %909 = vrot.lane.b32.xlu1 %v1480_v42, %s1497_s21 }
0x1107   :  { %v1170_v45 = vpop.f32.mrf.mxu0  ;;  %v1482_v48 = vpop.eup %1481 }
0x1108   :  { %1195 = vst.msk [vmem:[%s1828_s6 + $0x28] sm:$0xff] %vm1189_vm3, %v1176_v44  ;;  %v1171_v46 = vadd.f32 %v1762_v34, %v1170_v45  ;;  %v903_v49 = vadd.f32 1.0, %v1482_v48 }
0x110a   :  { %1194 = vst.msk [vmem:[%s1828_s6 + $0x20] sm:$0xff] %vm1189_vm3, %v1171_v46  ;;  %1483 = vrcp.f32 %v903_v49 }
0x1117   :  { %v1484_v50 = vpop.eup %1483 }
0x1118   :  { %v907_v53 = vmul.f32 %v1484_v50, %v1732_v14 }
0x1178   :  { %v910_v51 = vpop.permute.xlu1 %909 }
0x1179   :  { %v912_v52 = vmul.f32 %v1484_v50, %v910_v51 }
0x117b   :  { %914 = vrot.lane.b32.xlu0 %v912_v52, %s1498_s22 }
0x11ed   :  { %v915_v54 = vpop.permute.xlu0 %914 }
0x11ee   :  { %v917_v55 = vadd.f32 %v915_v54, %v907_v53 }
0x11f0   :  { %1485 = vtanh.f32 %v917_v55 }
0x11fd   :  { %v1486_v56 = vpop.eup %1485 }
0x11fe   :  { %920 = vrot.lane.b32.xlu1 %v1486_v56, %s1497_s21 }
0x1270   :  { %v921_v57 = vpop.permute.xlu1 %920 }
0x1271   :  { %v923_v15 = vmul.f32 %v1484_v50, %v921_v57 }
0x1273   :  { %925 = vrot.lane.b32.xlu0 %v923_v15, %s1498_s22 }
0x12e5   :  { %v926_v58 = vpop.permute.xlu0 %925 }
0x12e6   :  { %929 = vst.msk [vmem:[#allocation5 + $0x30] sm:$0xff] %vm27_vm1, %v926_v58  ;;  %1400 = vmatmul.mubr.msk.f32.vlgmr.msra.gmra.mxu1 %vm27_vm1, %v926_v58 }
0x12ed   :  { %v1047_v59 = vld [vmem:[#allocation5 + $0x30] sm:$0xff] }
0x12ee   :  { %1419 = vmatprep.mubr.msk.f32.mxu0 %vm27_vm1, %v1047_v59 }
0x13a6   :  { %v1000_v61 = vpop.f32.mrf.mxu1 }
0x13a7   :  { %v1004_v62 = vadd.f32 %v1000_v61, %v174_v60 }
0x13a8   :  { %v1401_v63 = vpop.f32.mrf.mxu1 }
0x13a9   :  { %1487 = vtanh.f32 %v1004_v62  ;;  %v1226_v0 = vmul.f32 -1.442695, %v1004_v62 }
0x13ab   :  { %1489 = vpow2.f32 %v1226_v0 }
0x13b6   :  { %v1488_v5 = vpop.eup %1487 }
0x13b7   :  { %1014 = vrot.lane.b32.xlu1 %v1488_v5, %s1497_s21 }
0x13b8   :  { %v1490_v1 = vpop.eup %1489 }
0x13b9   :  { %v1008_v2 = vadd.f32 1.0, %v1490_v1 }
0x13bb   :  { %1491 = vrcp.f32 %v1008_v2 }
0x13c8   :  { %v1492_v9 = vpop.eup %1491 }
0x13c9   :  { %v1012_v6 = vmul.f32 %v1492_v9, %v917_v55 }
0x1429   :  { %v1015_v4 = vpop.permute.xlu1 %1014 }
0x142a   :  { %v1017_v11 = vmul.f32 %v1492_v9, %v1015_v4 }
0x142c   :  { %1019 = vrot.lane.b32.xlu0 %v1017_v11, %s1498_s22 }
0x149e   :  { %v1020_v3 = vpop.permute.xlu0 %1019 }
0x149f   :  { %v1022_v17 = vadd.f32 %v1020_v3, %v1012_v6 }
0x14a1   :  { %1493 = vtanh.f32 %v1022_v17 }
0x14ae   :  { %v1494_v19 = vpop.eup %1493 }
0x14af   :  { %1025 = vrot.lane.b32.xlu1 %v1494_v19, %s1497_s21 }
0x14b3   :  { %1037 = vrot.lane.b32.xlu1 %v1022_v17, %s1499_s2 }
0x1521   :  { %v1026_v12 = vpop.permute.xlu1 %1025 }
0x1522   :  { %v1028_v7 = vmul.f32 %v1492_v9, %v1026_v12 }
0x1524   :  { %1030 = vrot.lane.b32.xlu0 %v1028_v7, %s1498_s22 }
0x1525   :  { %v1038_v14 = vpop.permute.xlu1 %1037 }
0x1526   :  { %1040 = vst.msk [vmem:[#allocation3] sm:$0xff] %vm27_vm1, %v1038_v14 }
0x1596   :  { %v1031_v8 = vpop.permute.xlu0 %1030 }
0x1597   :  { %1034 = vst.msk [vmem:[#allocation5 + $0x38] sm:$0xff] %vm27_vm1, %v1031_v8  ;;  %1035 = vst.msk [vmem:[#allocation2] sm:$0xff] %vm27_vm1, %v1031_v8 }
0x159e   :  { %v1048_v10 = vld [vmem:[#allocation5 + $0x38] sm:$0xff] }
0x159f   :  { %1420 = vmatmul.mubr.msk.f32.gmra.mxu0 %vm27_vm1, %v1048_v10 }
0x165f   :  { %v1421_v13 = vpop.f32.mrf.mxu0 }
0x1660   :  { %v1186_v16 = vadd.f32 %v1421_v13, %v1762_v34 }
0x1661   :  { %v1180_v18 = vpop.f32.mrf.mxu0 }
0x1662   :  { %1197 = vst.msk [vmem:[%s1828_s6 + $0x38] sm:$0xff] %vm1189_vm3, %v1186_v16  ;;  %v1181_v21 = vadd.f32 %v1762_v34, %v1180_v18 }
0x1664   :  { %1196 = vst.msk [vmem:[%s1828_s6 + $0x30] sm:$0xff] %vm1189_vm3, %v1181_v21 }

</bundles_post_ra>
